<compile_context>
chip_gen: v5e
topology: v5e:2x2
jax: 0.10.0
libtpu: 0.0.40
codegen_flags: <defaults>
</compile_context>

<pallas_src>
import functools

import jax
import jax.numpy as jnp
from jax.experimental import pallas as pl
from jax.experimental.pallas import tpu as pltpu


def _pooling_kernel(x_ref, inv_ref, col_ref, o_ref, *, pool_size, H, W):
    """x_ref/o_ref: (TC, H*W) lane-dense block of flattened planes.
    inv_ref: (1, H*W) resident reciprocal of the valid-tap count.
    col_ref: (1, H*W) resident column index (flat idx % W)."""
    p = pool_size // 2
    tc, L = x_ref.shape                       # L == H * W

    idx = jax.lax.broadcasted_iota(jnp.int32, (1, L), 1)   # flat index
    col = col_ref[...]                                      # (1, L) int32

    x = x_ref[...].astype(jnp.float32)                      # (TC, L)

    # ---- vertical pass: row offsets -p..p == lane shifts by d*W -----------
    v = x                                                    # center tap
    for d in range(1, p + 1):
        # tap at row r+d: y[l] = x[l + d*W]; valid where r < H - d
        down = pltpu.roll(x, shift=(-d * W) % L, axis=1)
        v = v + jnp.where(idx < (H - d) * W, down, 0.0)
        # tap at row r-d: y[l] = x[l - d*W]; valid where r >= d
        up = pltpu.roll(x, shift=(d * W) % L, axis=1)
        v = v + jnp.where(idx >= d * W, up, 0.0)

    # ---- horizontal pass: col offsets -p..p == lane shifts by d -----------
    acc = v
    for d in range(1, p + 1):
        right = pltpu.roll(v, shift=(-d) % L, axis=1)
        acc = acc + jnp.where(col < (W - d), right, 0.0)
        left = pltpu.roll(v, shift=d % L, axis=1)
        acc = acc + jnp.where(col >= d, left, 0.0)

    # avg - x ; divisor reciprocal precomputed in the wrapper (already f32).
    out = acc * inv_ref[...] - x_ref[...].astype(jnp.float32)
    o_ref[...] = out.astype(o_ref.dtype)


def _choose_block_planes(planes, L, itemsize, target_bytes=8 << 20):
    """Pick #planes per block from the REAL (lane-padded) VMEM footprint:
    ~4 live f32 temporaries + double-buffered in/out blocks in the I/O dtype.
    Keep >= ~8 grid steps when the plane count allows (pipelining / v7x
    megacore) and sublane-align the block when possible."""
    lpad = ((L + 127) // 128) * 128
    per_plane = lpad * (4 * 4 + 2 * 2 * itemsize)
    tc = max(1, int(target_bytes // per_plane))
    if planes >= 64:
        tc = min(tc, max(8, planes // 8))     # >= ~8 grid steps
    tc = min(tc, planes)
    if planes >= 8:
        tc8 = max(8, (tc // 8) * 8)           # sublane-aligned plane blocks
        if tc8 * per_plane <= 3 * target_bytes:
            tc = tc8
    return max(1, tc)


def pooling_forward(x, pool_size=3):
    """x: (N, C, H, W) -> AvgPool2d(pool_size, stride=1, pad=pool_size//2,
    count_include_pad=False)(x) - x.  Same shape and dtype as x."""
    assert pool_size % 2 == 1, "stride-1 'same' pooling requires odd pool_size"
    N, C, H, W = x.shape
    p = pool_size // 2
    planes = N * C
    L = H * W
    xf = x.reshape(planes, L)                 # lane-dense: whole plane on lanes

    # count_include_pad=False divisor (plane-independent) -> pass reciprocal.
    rows = jnp.arange(H)
    cols = jnp.arange(W)
    cnt_h = jnp.minimum(rows + p, H - 1) - jnp.maximum(rows - p, 0) + 1
    cnt_w = jnp.minimum(cols + p, W - 1) - jnp.maximum(cols - p, 0) + 1
    inv_cnt = (1.0 / (cnt_h[:, None] * cnt_w[None, :])).astype(jnp.float32)
    inv_cnt = inv_cnt.reshape(1, L)
    col_ids = jnp.broadcast_to(jnp.arange(W, dtype=jnp.int32), (H, W)).reshape(1, L)

    itemsize = x.dtype.itemsize
    tc = _choose_block_planes(planes, L, itemsize)
    grid = (pl.cdiv(planes, tc),)

    kern = functools.partial(_pooling_kernel, pool_size=pool_size, H=H, W=W)
    out = pl.pallas_call(
        kern,
        out_shape=jax.ShapeDtypeStruct((planes, L), x.dtype),
        grid=grid,
        in_specs=[
            pl.BlockSpec((tc, L), lambda i: (i, 0)),
            pl.BlockSpec((1, L), lambda i: (0, 0)),    # resident across grid
            pl.BlockSpec((1, L), lambda i: (0, 0)),    # resident across grid
        ],
        out_specs=pl.BlockSpec((tc, L), lambda i: (i, 0)),
        compiler_params=pltpu.CompilerParams(
            dimension_semantics=("parallel",),
            vmem_limit_bytes=32 << 20),
        cost_estimate=pl.CostEstimate(
            flops=(4 * (pool_size - 1) + 2) * planes * L,
            transcendentals=0,
            bytes_accessed=2 * planes * L * itemsize + 2 * L * 4),
    )(xf, inv_cnt, col_ids)
    return out.reshape(N, C, H, W)


def _reference(x, pool_size=3):
    """Pure-JAX reference of AvgPool2d(count_include_pad=False) - x."""
    p = pool_size // 2
    N, C, H, W = x.shape
    xp = jnp.pad(x, ((0, 0), (0, 0), (p, p), (p, p)))
    op = jnp.pad(jnp.ones_like(x), ((0, 0), (0, 0), (p, p), (p, p)))
    s = jnp.zeros_like(x)
    c = jnp.zeros_like(x)
    for i in range(pool_size):
        for j in range(pool_size):
            s = s + xp[:, :, i:i + H, j:j + W]
            c = c + op[:, :, i:i + H, j:j + W]
    return s / c - x


if __name__ == "__main__":
    key = jax.random.PRNGKey(0)
    x = jax.random.normal(key, (2, 4, 16, 16), dtype=jnp.float32)

    out = pooling_forward(x, pool_size=3)
    out = jax.block_until_ready(out)

    ref = _reference(x, pool_size=3)
    assert out.shape == x.shape and out.dtype == x.dtype
    assert float(jnp.max(jnp.abs(out - ref))) < 1e-5

    print("KERNEL_OK")
</pallas_src>

<mosaic_0001>
module attributes {stable_mosaic.version = 11 : i64} {
  func.func @_pooling_kernel(%arg0: i32, %arg1: memref<8x256xf32, #tpu.memory_space<vmem>>, %arg2: memref<1x256xf32, #tpu.memory_space<vmem>>, %arg3: memref<1x256xi32, #tpu.memory_space<vmem>>, %arg4: memref<8x256xf32, #tpu.memory_space<vmem>>) attributes {dimension_semantics = [#tpu.dimension_semantics<parallel>], iteration_bounds = array<i64: 1>, scalar_prefetch = 0 : i64, scratch_operands = 0 : i64, tpu.core_type = #tpu.core_type<tc>, window_params = [{transform_indices = @transform_0, window_bounds = array<i64: 8, 256>}, {pipeline_mode = #tpu.pipeline_mode<synchronous>, transform_indices = @transform_1, window_bounds = array<i64: 1, 256>}, {pipeline_mode = #tpu.pipeline_mode<synchronous>, transform_indices = @transform_2, window_bounds = array<i64: 1, 256>}, {transform_indices = @transform_3, window_bounds = array<i64: 8, 256>}]} {
    %0 = tpu.iota {dimensions = array<i32: 1>} : vector<1x256xi32>
    %c0 = arith.constant 0 : index
    %c0_0 = arith.constant 0 : index
    %1 = vector.load %arg3[%c0, %c0_0] : memref<1x256xi32, #tpu.memory_space<vmem>>, vector<1x256xi32>
    %c0_1 = arith.constant 0 : index
    %c0_2 = arith.constant 0 : index
    %2 = vector.load %arg1[%c0_1, %c0_2] : memref<8x256xf32, #tpu.memory_space<vmem>>, vector<8x256xf32>
    %c240_i32 = arith.constant 240 : i32
    %3 = tpu.dynamic_rotate %2 by %c240_i32 dim 1 : vector<8x256xf32>, i32 -> vector<8x256xf32>
    %c240_i32_3 = arith.constant 240 : i32
    %4 = vector.broadcast %c240_i32_3 : i32 to vector<1x256xi32>
    %5 = arith.cmpi slt, %0, %4 : vector<1x256xi32>
    %cst = arith.constant 0.000000e+00 : f32
    %6 = vector.shape_cast %5 : vector<1x256xi1> to vector<1x256xi1>
    %7 = vector.broadcast %6 : vector<1x256xi1> to vector<8x256xi1>
    %8 = vector.broadcast %cst : f32 to vector<8x256xf32>
    %9 = arith.select %7, %3, %8 : vector<8x256xi1>, vector<8x256xf32>
    %10 = arith.addf %2, %9 : vector<8x256xf32>
    %c16_i32 = arith.constant 16 : i32
    %11 = tpu.dynamic_rotate %2 by %c16_i32 dim 1 : vector<8x256xf32>, i32 -> vector<8x256xf32>
    %c16_i32_4 = arith.constant 16 : i32
    %12 = vector.broadcast %c16_i32_4 : i32 to vector<1x256xi32>
    %13 = arith.cmpi sge, %0, %12 : vector<1x256xi32>
    %cst_5 = arith.constant 0.000000e+00 : f32
    %14 = vector.shape_cast %13 : vector<1x256xi1> to vector<1x256xi1>
    %15 = vector.broadcast %14 : vector<1x256xi1> to vector<8x256xi1>
    %16 = vector.broadcast %cst_5 : f32 to vector<8x256xf32>
    %17 = arith.select %15, %11, %16 : vector<8x256xi1>, vector<8x256xf32>
    %18 = arith.addf %10, %17 : vector<8x256xf32>
    %c255_i32 = arith.constant 255 : i32
    %19 = tpu.dynamic_rotate %18 by %c255_i32 dim 1 : vector<8x256xf32>, i32 -> vector<8x256xf32>
    %c15_i32 = arith.constant 15 : i32
    %20 = vector.broadcast %c15_i32 : i32 to vector<1x256xi32>
    %21 = arith.cmpi slt, %1, %20 : vector<1x256xi32>
    %cst_6 = arith.constant 0.000000e+00 : f32
    %22 = vector.shape_cast %21 : vector<1x256xi1> to vector<1x256xi1>
    %23 = vector.broadcast %22 : vector<1x256xi1> to vector<8x256xi1>
    %24 = vector.broadcast %cst_6 : f32 to vector<8x256xf32>
    %25 = arith.select %23, %19, %24 : vector<8x256xi1>, vector<8x256xf32>
    %26 = arith.addf %18, %25 : vector<8x256xf32>
    %c1_i32 = arith.constant 1 : i32
    %27 = tpu.dynamic_rotate %18 by %c1_i32 dim 1 : vector<8x256xf32>, i32 -> vector<8x256xf32>
    %c1_i32_7 = arith.constant 1 : i32
    %28 = vector.broadcast %c1_i32_7 : i32 to vector<1x256xi32>
    %29 = arith.cmpi sge, %1, %28 : vector<1x256xi32>
    %cst_8 = arith.constant 0.000000e+00 : f32
    %30 = vector.shape_cast %29 : vector<1x256xi1> to vector<1x256xi1>
    %31 = vector.broadcast %30 : vector<1x256xi1> to vector<8x256xi1>
    %32 = vector.broadcast %cst_8 : f32 to vector<8x256xf32>
    %33 = arith.select %31, %27, %32 : vector<8x256xi1>, vector<8x256xf32>
    %34 = arith.addf %26, %33 : vector<8x256xf32>
    %c0_9 = arith.constant 0 : index
    %c0_10 = arith.constant 0 : index
    %35 = vector.load %arg2[%c0_9, %c0_10] : memref<1x256xf32, #tpu.memory_space<vmem>>, vector<1x256xf32>
    %36 = vector.broadcast %35 : vector<1x256xf32> to vector<8x256xf32>
    %37 = arith.mulf %34, %36 : vector<8x256xf32>
    %c0_11 = arith.constant 0 : index
    %c0_12 = arith.constant 0 : index
    %38 = vector.load %arg1[%c0_11, %c0_12] : memref<8x256xf32, #tpu.memory_space<vmem>>, vector<8x256xf32>
    %39 = arith.subf %37, %38 : vector<8x256xf32>
    %c0_13 = arith.constant 0 : index
    %c0_14 = arith.constant 0 : index
    %40 = vector.load %arg4[%c0_13, %c0_14] : memref<8x256xf32, #tpu.memory_space<vmem>>, vector<8x256xf32>
    tpu.vector_store %arg4[%c0_13, %c0_14], %39 {strides = array<i32>} : memref<8x256xf32, #tpu.memory_space<vmem>>, vector<8x256xf32>,
    return
  }
  func.func @transform_0(%arg0: i32) -> (i32, i32) {
    %c0_i32 = arith.constant 0 : i32
    %c0_i32_0 = arith.constant 0 : i32
    return %arg0, %c0_i32 : i32, i32
  }
  func.func @transform_1(%arg0: i32) -> (i32, i32) {
    %c0_i32 = arith.constant 0 : i32
    %c0_i32_0 = arith.constant 0 : i32
    %c0_i32_1 = arith.constant 0 : i32
    return %c0_i32, %c0_i32_0 : i32, i32
  }
  func.func @transform_2(%arg0: i32) -> (i32, i32) {
    %c0_i32 = arith.constant 0 : i32
    %c0_i32_0 = arith.constant 0 : i32
    %c0_i32_1 = arith.constant 0 : i32
    return %c0_i32, %c0_i32_0 : i32, i32
  }
  func.func @transform_3(%arg0: i32) -> (i32, i32) {
    %c0_i32 = arith.constant 0 : i32
    %c0_i32_0 = arith.constant 0 : i32
    return %arg0, %c0_i32 : i32, i32
  }
}

</mosaic_0001>

<bundles_post_ra>
// kernel: tpu_custom_call.1
= control target key start
LH: loop header
LB: loop body
LE: loop exit
PB: predicated region body
PF: predicated region fallthrough
CT: control target
= control target key end

     0   :  { %8 = vsyncpa [#allocation3], 0  ;;  %s336_s0 = inlined_call_operand.hbm [shape: f32[8,256], index: 0, kind: input, shape index: {}]   ;;  %s337_s1 = inlined_call_operand.hbm [shape: f32[1,256], index: 1, kind: input, shape index: {}]   ;;  %s338_s2 = inlined_call_operand.hbm [shape: s32[1,256], index: 2, kind: input, shape index: {}]   ;;  %s339_s3 = inlined_call_operand.hbm [shape: f32[8,256], index: 3, kind: output, shape index: {}]  }
   0x1   :  { %9 = vsyncpa [#allocation6], 0  ;;  %s27_s14 = sshll.u32 %s337_s1, 4  ;;  %s28_s14 = int_to_ptr.hbm [resolvable:$true] %s27_s14 }
   0x2   :  { %10 = vsyncpa [#allocation4], 0  ;;  %s271_s15 = smov [#allocation5]   ;;  %s16_s19 = sshll.u32 %s336_s0, 4  ;;  %s17_s19 = int_to_ptr.hbm [resolvable:$true] %s16_s19 }
   0x3   :  { %s29_s16 = sshll.u32 %s271_s15, 4  ;;  %s272_s20 = smov [#allocation2]   ;;  %s30_s16 = int_to_ptr.vmem [resolvable:$true] %s29_s16 }
   0x4   :  { %32 = dma.hbm_to_vmem [thread:$0]  %s28_s14, 32, %s30_s16, [#allocation6]  }
   0x5   :  { %s18_s21 = sshll.u32 %s272_s20, 4  ;;  %s38_s24 = sshll.u32 %s338_s2, 4  ;;  %s19_s21 = int_to_ptr.vmem [resolvable:$true] %s18_s21  ;;  %s39_s24 = int_to_ptr.hbm [resolvable:$true] %s38_s24 }
   0x6   :  { %21 = dma.hbm_to_vmem [thread:$0]  %s17_s19, 256, %s19_s21, [#allocation3]  }
   0x7   :  { %s273_s1 = smov [#allocation7]  }
   0x8   :  { %s40_s25 = sshll.u32 %s273_s1, 4  ;;  %s41_s25 = int_to_ptr.vmem [resolvable:$true] %s40_s25 }
   0x9   :  { %43 = dma.hbm_to_vmem [thread:$0]  %s39_s24, 32, %s41_s25, [#allocation6]  }
   0xa   :  { %265 = dma.done.wait [#allocation3], 256  }
   0xb   :  { %266 = vsyncadd [#allocation3], 4294967040 }
   0xc   :  { %267 = dma.done.wait [#allocation6], 64  }
   0xd   :  { %268 = vsyncadd [#allocation6], 4294967232  ;;  %v309_v0 = vld [vmem:[#allocation2] sm:$0xff]  ;;  %s274_s0 = smov 16   ;;  %s275_s26 = smov 112   ;;  %v313_v1 = vld [vmem:[#allocation2 + $0x8] sm:$0xff]  ;;  %v56_v2 = vlaneseq }
   0xe   :  { %79 = vrot.lane.b32.xlu1 %v309_v0, %s274_s0  ;;  %62 = vrot.lane.b32.xlu0 %v309_v0, %s275_s26  ;;  %s276_s2 = smov 1   ;;  %s277_s27 = smov 127   ;;  %v59_v19 = vld [vmem:[#allocation7] sm:$0x3]  ;;  %v278_v21 = vmov 0  }
   0xf   :  { %v57_v3 = vand.u32 127, %v56_v2  ;;  %vm103_vm4 = vcmp.lt.s32.totalorder %v59_v19, 15  ;;  %vm120_vm5 = vcmp.ge.s32.totalorder %v59_v19, 1  ;;  %v130_v33 = vld [vmem:[#allocation5] sm:$0x3]  ;;  %s279_s28 = smov [#allocation8]  }
  0x10   :  { %v104_v22 = vsel %vm103_vm4, 1, %v278_v21  ;;  %v121_v26 = vsel %vm120_vm5, 1, %v278_v21  ;;  %v132_v37 = vperm.slane %v130_v33, 0  ;;  %v133_v38 = vperm.slane %v130_v33, 1  ;;  %s147_s29 = sshll.u32 %s279_s28, 4  ;;  %s149_s5 = sshll.u32 %s339_s3, 4  ;;  %s148_s29 = int_to_ptr.vmem [resolvable:$true] %s147_s29  ;;  %s150_s5 = int_to_ptr.hbm [resolvable:$true] %s149_s5 }
  0x11   :  { %v58_v6 = vadd.s32 128, %v57_v3  ;;  %vm83_vm0 = vcmp.lt.s32.totalorder %v57_v3, 16  ;;  %vm66_vm1 = vcmp.lt.s32.totalorder %v57_v3, 112  ;;  %vm86_vm2 = vcmp.ge.s32.totalorder %v57_v3, 16 }
  0x12   :  { %v105_v23 = vperm.slane %v104_v22, 0  ;;  %v106_v24 = vperm.slane %v104_v22, 1  ;;  %vm100_vm6 = vcmp.lt.s32.totalorder %v57_v3, 127  ;;  %v122_v31 = vperm.slane %v121_v26, 0 }
  0x13   :  { %vm70_vm3 = vcmp.lt.s32.totalorder %v58_v6, 240  ;;  %v123_v32 = vperm.slane %v121_v26, 1  ;;  %vm117_vm9 = vcmp.lt.s32.totalorder %v57_v3, 1 }
  0x14   :  { %vm319_vm7 = vcmp.eq.s32.totalorder %v105_v23, 1  ;;  %vm323_vm8 = vcmp.eq.s32.totalorder %v106_v24, 1  ;;  %vm124_vm10 = vcmp.eq.s32.totalorder %v122_v31, 1 }
  0x15   :  { %vm125_vm11 = vcmp.eq.s32.totalorder %v123_v32, 1 }
  0x16   :  { %81 = vrot.lane.b32.xlu1 %v313_v1, %s274_s0  ;;  %64 = vrot.lane.b32.xlu0 %v313_v1, %s275_s26 }
  0x80   :  { %v80_v4 = vpop.permute.xlu1 %79  ;;  %v63_v5 = vpop.permute.xlu0 %62 }
  0x88   :  { %v82_v7 = vpop.permute.xlu1 %81  ;;  %v65_v8 = vpop.permute.xlu0 %64 }
  0x89   :  { %v85_v9 = vsel %vm83_vm0, %v82_v7, %v80_v4  ;;  %v67_v10 = vsel %vm66_vm1, %v63_v5, %v65_v8  ;;  %v68_v11 = vsel %vm66_vm1, %v65_v8, %v63_v5  ;;  %v84_v16 = vsel %vm83_vm0, %v80_v4, %v82_v7 }
  0x8a   :  { %v92_v12 = vsel %vm86_vm2, %v85_v9, 0.0  ;;  %v76_v13 = vsel %vm70_vm3, %v68_v11, 0.0  ;;  %v77_v14 = vadd.f32 %v67_v10, %v309_v0 }
  0x8b   :  { %v78_v15 = vadd.f32 %v76_v13, %v313_v1 }
  0x8c   :  { %v94_v17 = vadd.f32 %v92_v12, %v77_v14 }
  0x8d   :  { %v95_v18 = vadd.f32 %v84_v16, %v78_v15 }
  0x8e   :  { %113 = vrot.lane.b32.xlu0 %v94_v17, %s276_s2  ;;  %96 = vrot.lane.b32.xlu2 %v94_v17, %s277_s27 }
  0x8f   :  { %115 = vrot.lane.b32.xlu1 %v95_v18, %s276_s2 }
  0x96   :  { %98 = vrot.lane.b32.xlu2 %v95_v18, %s277_s27 }
  0xe8   :  { %v97_v20 = vpop.permute.xlu2 %96 }
  0xf0   :  { %v99_v25 = vpop.permute.xlu2 %98 }
  0xf1   :  { %v101_v29 = vsel %vm100_vm6, %v97_v20, %v99_v25  ;;  %v102_v30 = vsel %vm100_vm6, %v99_v25, %v97_v20 }
  0xf2   :  { %v109_v34 = vsel %vm319_vm7, %v101_v29, 0.0  ;;  %v110_v35 = vsel %vm323_vm8, %v102_v30, 0.0 }
  0xf3   :  { %v111_v40 = vadd.f32 %v109_v34, %v94_v17  ;;  %v112_v41 = vadd.f32 %v110_v35, %v95_v18 }
 0x100   :  { %v114_v36 = vpop.permute.xlu0 %113 }
 0x101   :  { %v116_v39 = vpop.permute.xlu1 %115 }
 0x102   :  { %v118_v42 = vsel %vm117_vm9, %v114_v36, %v116_v39  ;;  %v119_v43 = vsel %vm117_vm9, %v116_v39, %v114_v36 }
 0x103   :  { %v126_v44 = vsel %vm124_vm10, %v119_v43, 0.0  ;;  %v127_v45 = vsel %vm125_vm11, %v118_v42, 0.0 }
 0x104   :  { %v128_v46 = vadd.f32 %v126_v44, %v111_v40  ;;  %v129_v47 = vadd.f32 %v127_v45, %v112_v41 }
 0x106   :  { %v136_v48 = vmul.f32 %v132_v37, %v128_v46  ;;  %v137_v49 = vmul.f32 %v133_v38, %v129_v47 }
 0x108   :  { %v138_v50 = vsub.f32 %v136_v48, %v309_v0  ;;  %v139_v51 = vsub.f32 %v137_v49, %v313_v1 }
 0x10a   :  { %140 = vst [vmem:[#allocation8] sm:$0xff] %v138_v50 }
 0x10b   :  { %141 = vst [vmem:[#allocation8 + $0x8] sm:$0xff] %v139_v51 }
 0x10c   :  { %152 = dma.vmem_to_hbm [thread:$0]  %s148_s29, 256, %s150_s5, [#allocation4]  }
 0x10d   :  { %269 = dma.done.wait [#allocation4], 256  }
 0x10e   :  { %270 = vsyncadd [#allocation4], 4294967040 }
 0x10f   :  { %157 = vsyncpa [#allocation3], 1 }
 0x110   :  { %158 = vsyncpa [#allocation6], 1 }
 0x111   :  { %159 = vsyncpa [#allocation4], 1 }

</bundles_post_ra>
